<compile_context>
chip_gen: v6e
topology: v6e:2x2x1
jax: 0.10.0
libtpu: 0.0.40
codegen_flags: <defaults>
</compile_context>

<pallas_src>
import jax
import jax.numpy as jnp
from jax.experimental import pallas as pl
from jax.experimental.pallas import tpu as pltpu


# Below this size the kernel-launch / grid-step overhead dominates; just
# return x (it is the exact forward semantics anyway).
_MIN_PALLAS_BYTES = 1 << 20          # 1 MiB
# Target bytes per DMA tile (HBM->HBM: no VMEM buffering, so this only
# controls descriptor granularity / megacore split).
_TARGET_DMA_BYTES = 8 << 20          # 8 MiB


def _choose_num_tiles(rows, row_bytes):
    """Pick a tile count g that divides `rows` exactly.

    Prefers >= 2 tiles (so both v7x TensorCores issue DMAs) and ~8 MiB per
    tile. Falls back to a single whole-array DMA if no convenient divisor
    exists (still correct, still a contiguous roofline copy).
    """
    if rows < 2:
        return 1
    total_bytes = rows * row_bytes
    want = max(2, -(-total_bytes // _TARGET_DMA_BYTES))   # ceil div
    want = min(want, rows)
    for g in range(want, min(rows, want + 64) + 1):
        if rows % g == 0:
            return g
    return 1


def _make_tiled_dma_kernel(tile_rows):
    def kernel(x_hbm, o_hbm, sem):
        i = pl.program_id(0)
        start = pl.multiple_of(i * tile_rows, tile_rows)
        cp = pltpu.make_async_copy(
            x_hbm.at[pl.ds(start, tile_rows), :],
            o_hbm.at[pl.ds(start, tile_rows), :],
            sem,
        )
        cp.start()
        cp.wait()
    return kernel


def _whole_dma_kernel(x_hbm, o_hbm, sem):
    cp = pltpu.make_async_copy(x_hbm, o_hbm, sem)
    cp.start()
    cp.wait()


def _pallas_identity_copy(x, *, min_pallas_bytes=_MIN_PALLAS_BYTES):
    """Identity implemented as direct HBM->HBM DMA(s) inside a Pallas kernel."""
    itemsize = jnp.dtype(x.dtype).itemsize
    total = int(x.size)
    nbytes = total * itemsize

    if nbytes < min_pallas_bytes:
        # Launch overhead would dominate; the semantically identical fast
        # path is the true identity.
        return x

    orig_shape = x.shape

    if total % 128 == 0:
        # Reshape to a 2-D slab with a 128-wide minor axis purely so row
        # tiles are easy to express; the DMA itself is a contiguous copy.
        cols = 128
        rows = total // cols
        row_bytes = cols * itemsize
        g = _choose_num_tiles(rows, row_bytes)
    else:
        g = 1

    if g > 1:
        tile_rows = rows // g
        x2d = x.reshape(rows, cols)
        out2d = pl.pallas_call(
            _make_tiled_dma_kernel(tile_rows),
            out_shape=jax.ShapeDtypeStruct((rows, cols), x.dtype),
            grid=(g,),
            in_specs=[pl.BlockSpec(memory_space=pl.ANY)],
            out_specs=pl.BlockSpec(memory_space=pl.ANY),
            scratch_shapes=[pltpu.SemaphoreType.DMA],
            compiler_params=pltpu.CompilerParams(
                dimension_semantics=("parallel",),
                has_side_effects=True,
            ),
        )(x2d)
        return out2d.reshape(orig_shape)

    # Single whole-array DMA on the original shape (no tiling needed).
    return pl.pallas_call(
        _whole_dma_kernel,
        out_shape=jax.ShapeDtypeStruct(orig_shape, x.dtype),
        in_specs=[pl.BlockSpec(memory_space=pl.ANY)],
        out_specs=pl.BlockSpec(memory_space=pl.ANY),
        scratch_shapes=[pltpu.SemaphoreType.DMA],
        compiler_params=pltpu.CompilerParams(has_side_effects=True),
    )(x)


def autoencoder_forward(x, *, use_pallas_copy=False,
                        min_pallas_bytes=_MIN_PALLAS_BYTES):
    """Forward pass of the 'none' Autoencoder: identity.

    Default (use_pallas_copy=False) is the truly optimal path: return x with
    zero bytes moved and no kernel launch.  With use_pallas_copy=True the
    identity is routed through a Pallas HBM->HBM DMA kernel (tiled, exact
    divisors, megacore-parallel), with a size guard so tiny inputs still take
    the free path unless min_pallas_bytes is lowered.
    """
    if not use_pallas_copy:
        return x
    return _pallas_identity_copy(x, min_pallas_bytes=min_pallas_bytes)


def autoencoder_get_code(x, *, use_pallas_copy=False,
                         min_pallas_bytes=_MIN_PALLAS_BYTES):
    # getCode is also identity in the 'none' autoencoder.
    return autoencoder_forward(x, use_pallas_copy=use_pallas_copy,
                               min_pallas_bytes=min_pallas_bytes)


if __name__ == "__main__":
    key = jax.random.PRNGKey(0)
    # Small NCHW input consistent with an autoencoder forward: (N, C, H, W)
    x = jax.random.normal(key, (2, 4, 16, 16), dtype=jnp.float32)

    # Default (optimal) path: true identity, zero bytes moved.
    y_fast = autoencoder_forward(x)
    assert y_fast is x or bool(jnp.all(y_fast == x))

    # Force the Pallas HBM->HBM DMA path even for this small test input.
    y = autoencoder_forward(x, use_pallas_copy=True, min_pallas_bytes=0)
    jax.block_until_ready(y)
    assert y.shape == x.shape and y.dtype == x.dtype
    assert bool(jnp.all(y == x))

    # getCode is identity too.
    z = autoencoder_get_code(x, use_pallas_copy=True, min_pallas_bytes=0)
    jax.block_until_ready(z)
    assert bool(jnp.all(z == x))

    print("KERNEL_OK")
</pallas_src>

<mosaic_0001>
module attributes {stable_mosaic.version = 11 : i64} {
  func.func @kernel(%arg0: i32, %arg1: memref<16x128xf32, #tpu.memory_space<any>>, %arg2: memref<16x128xf32, #tpu.memory_space<any>>, %arg3: memref<!tpu.dma_semaphore, #tpu.memory_space<semaphore_mem>>) attributes {dimension_semantics = [#tpu.dimension_semantics<parallel>], iteration_bounds = array<i64: 2>, scalar_prefetch = 0 : i64, scratch_operands = 1 : i64, tpu.core_type = #tpu.core_type<tc>, window_params = [{}, {}]} {
    %c8_i32 = arith.constant 8 : i32
    %0 = arith.muli %arg0, %c8_i32 : i32
    %1 = tpu.assume_multiple %0, 8 : i32
    %c0_i32 = arith.constant 0 : i32
    %2 = tpu.memref_slice %arg1[%1, %c0_i32] : memref<16x128xf32, #tpu.memory_space<any>> -> memref<8x128xf32, #tpu.memory_space<any>>
    %c0_i32_0 = arith.constant 0 : i32
    %3 = tpu.memref_slice %arg2[%1, %c0_i32_0] : memref<16x128xf32, #tpu.memory_space<any>> -> memref<8x128xf32, #tpu.memory_space<any>>
    tpu.enqueue_dma source(%2 : memref<8x128xf32, #tpu.memory_space<any>>) target(%3 : memref<8x128xf32, #tpu.memory_space<any>>) target_semaphore(%arg3 : memref<!tpu.dma_semaphore, #tpu.memory_space<semaphore_mem>>)
    %c0_i32_1 = arith.constant 0 : i32
    %4 = tpu.memref_slice %arg1[%1, %c0_i32_1] : memref<16x128xf32, #tpu.memory_space<any>> -> memref<8x128xf32, #tpu.memory_space<any>>
    %c0_i32_2 = arith.constant 0 : i32
    %5 = tpu.memref_slice %arg2[%1, %c0_i32_2] : memref<16x128xf32, #tpu.memory_space<any>> -> memref<8x128xf32, #tpu.memory_space<any>>
    tpu.wait_dma2 semaphore(%arg3 : memref<!tpu.dma_semaphore, #tpu.memory_space<semaphore_mem>>) src(%4 : memref<8x128xf32, #tpu.memory_space<any>>) dst(%5 : memref<8x128xf32, #tpu.memory_space<any>>)
    return
  }
}

</mosaic_0001>

<bundles_post_ra>
// kernel: tpu_custom_call.1
= control target key start
LH: loop header
LB: loop body
LE: loop exit
PB: predicated region body
PF: predicated region fallthrough
CT: control target
= control target key end

     0   :  { %s66_s6 = smov 0   ;;  %s89_s0 = inlined_call_operand.hbm [shape: f32[16,128], index: 0, kind: input, shape index: {}]   ;;  %s90_s1 = inlined_call_operand.hbm [shape: f32[16,128], index: 1, kind: output, shape index: {}]  }
   0x1 LB: > { %s47_s7 = sshll.u32 %s68_s6, 7  ;;  %s70_s14 = smov [#allocation2]   ;;  %s68_s6 = sphi %s66_s6, %s11_s6  }
   0x2   : > { %s15_s10 = scalar_lea.hbm %s89_s0, %s47_s7  ;;  %s17_s13 = scalar_lea.hbm %s90_s1, %s47_s7 }
   0x3   : > { %s71_s15 = smov 131072   ;;  %s72_s16 = smov 0  }
   0x4   : > { %24 = dma.general %s15_s10, 128, %s17_s13, %s70_s14, %s71_s15, [#allocation4], %s72_s16, 0  }
   0x5   : > { %64 = dma.done.wait [#allocation2], 128 }
   0x6   : > { %65 = vsyncadd [#allocation2], 4294967168  ;;  %s11_s6 = sadd.s32 1, %s68_s6  }
   0x7   : > { %p8_p0 = scmp.ge.s32.totalorder %s11_s6, 2  }
   0x9   :  { %10 = sbr.rel (!%p8_p0) target bundleno = 1 (0x1), region = 21 }
   0xe   :  { %28 = vsyncmov [#allocation2] }
  0x11   :  { %s29_s17 = vpop.sfrf %28 }
  0x12   :  { %p46_p1 = scmp.ne.s32.totalorder %s29_s17, 0 }
  0x14   :  { %33 = shalt.err (%p46_p1)  }

</bundles_post_ra>
